<compile_context>
chip_gen: v6e
topology: v6e:2x2x1
jax: 0.10.0
libtpu: 0.0.40
codegen_flags: <defaults>
</compile_context>

<pallas_src>
from functools import partial

import jax
import jax.numpy as jnp
import numpy as np
from jax import lax
from jax.experimental import pallas as pl
from jax.experimental.pallas import tpu as pltpu

_HP = lax.Precision.HIGHEST
_INV_SQRT2 = np.float32(0.7071067811865476)


# ---------------------------------------------------------------------------
# in-kernel math helpers (exact-erf GELU, PyTorch LayerNorm eps=1e-5, bf16 MXU)
# ---------------------------------------------------------------------------
def _gelu(x):
    # F.gelu default (approximate='none') -> exact erf formulation (f32 VPU math)
    return 0.5 * x * (1.0 + lax.erf(x * _INV_SQRT2))


def _layernorm(x, gamma, beta, eps=1e-5):
    mu = jnp.mean(x, axis=-1, keepdims=True)
    var = jnp.mean(jnp.square(x - mu), axis=-1, keepdims=True)
    return (x - mu) * lax.rsqrt(var + eps) * gamma + beta


def _mxu(a, w_bf16):
    # bf16 MXU inputs, f32 accumulation; weights are pre-cast to bf16 in the wrapper.
    return jnp.dot(a.astype(jnp.bfloat16), w_bf16, preferred_element_type=jnp.float32)


def _round_up(n, m):
    return ((n + m - 1) // m) * m


def _pick_rows_tile(rows, pref):
    """Row-block size (multiple of 8) and padded row count; prefers >=2 grid steps."""
    rows_pad = _round_up(rows, 8)
    tb = min(pref, rows_pad)
    if rows_pad // tb < 2 and rows_pad >= 16:   # split so grid >= 2 (pipelining / megacore)
        tb = _round_up(rows_pad // 2, 8)
    rows_pad = _round_up(rows_pad, tb)
    return tb, rows_pad


# ---------------------------------------------------------------------------
# Kernel A: AutoEncoder (encoder + decoder), dec.rec @ lm.embed folded in.
#   outputs: pred_set (lane-padded) and the per-token pre-LayerNorm lm embedding
#   e = gelu(pred_cte_token @ lm.embed + lm.bias) laid out lane-dense as (TB, feat).
# ---------------------------------------------------------------------------
def autoencoder_kernel(x_ref, w1_ref, wlat_ref, wed_ref, wrec_ref, small_ref, lmb_ref,
                       pred_set_ref, emb_ref):
    sp = small_ref[...]
    enc_b1, enc_g, enc_b = sp[0:1], sp[1:2], sp[2:3]
    dec_b1, dec_g, dec_b = sp[3:4], sp[4:5], sp[5:6]

    # ---- Encoder: Linear -> GELU -> LayerNorm
    h = _gelu(_mxu(x_ref[...], w1_ref[...]) + enc_b1)          # (TB, n_embd) f32
    h = _layernorm(h, enc_g, enc_b)
    hb = h.astype(jnp.bfloat16)

    # ---- enc.lat (zero-padded to a 128-lane multiple) -> lane-dense pred_set store
    pred_set_ref[...] = jnp.dot(hb, wlat_ref[...], preferred_element_type=jnp.float32)

    # ---- folded enc.lat @ dec.fc1 -> decoder GELU -> LayerNorm
    d = _gelu(jnp.dot(hb, wed_ref[...], preferred_element_type=jnp.float32) + dec_b1)
    d = _layernorm(d, dec_g, dec_b)

    # ---- folded dec.rec @ lm.embed (+ tiled lm bias), GELU in the lane-dense layout
    emb_ref[...] = _gelu(_mxu(d, wrec_ref[...]) + lmb_ref[...])


# ---------------------------------------------------------------------------
# Kernel B: LangLayer tail (embed+GELU already applied in kernel A):
#   per-token LayerNorm(n_embd) -> dense head (padded to a 128 multiple of n_vocab).
# Grid: (token-row blocks, vocab-column tiles), both parallel.
# ---------------------------------------------------------------------------
def langlayer_kernel(e_ref, lnp_ref, head_ref, out_ref):
    lp = lnp_ref[...]
    t = _layernorm(e_ref[...], lp[0:1], lp[1:2])
    out_ref[...] = _mxu(t, head_ref[...])


# ---------------------------------------------------------------------------
# wrapper: weight folding / padding / bf16 cast, grid setup, two pallas_calls
# ---------------------------------------------------------------------------
def _fuse_params(params, *, max_len, n_embd):
    feat = n_embd * max_len
    n_vocab = params["lm_head_w"].shape[1]
    set_cols = _round_up(n_embd, 128)
    n_vocab_pad = _round_up(n_vocab, 128)
    bf16 = jnp.bfloat16

    # enc.lat padded to a 128-lane multiple (lane-dense pred_set store; sliced in wrapper)
    w_lat = jnp.zeros((n_embd, set_cols), jnp.float32).at[:, :n_embd].set(params["enc_lat"])
    # fold enc.lat -> dec.fc1 (two Linears with no nonlinearity in between), f32 then cast once
    w_ed = jnp.dot(params["enc_lat"], params["dec_w1"], precision=_HP)
    # fold dec.rec -> lm.embed per max_len-token chunk (still dense, (n_embd, feat))
    dec_rec = params["dec_rec"].reshape(n_embd, max_len, n_embd)
    w_rec = jnp.einsum("ksn,nm->ksm", dec_rec, params["lm_w"],
                       precision=_HP).reshape(n_embd, feat)
    # lm head padded to a 128-lane multiple of n_vocab (lane-dense pred_ids store)
    head = jnp.zeros((n_embd, n_vocab_pad), jnp.float32).at[:, :n_vocab].set(params["lm_head_w"])

    # packed tiny (1, dim) params (kept f32 for the element-wise path)
    small = jnp.concatenate([params["enc_b1"], params["enc_ln_g"], params["enc_ln_b"],
                             params["dec_b1"], params["dec_ln_g"], params["dec_ln_b"]], axis=0)
    lmb = jnp.tile(params["lm_b"], (1, max_len))                              # (1, feat)
    lnp = jnp.concatenate([params["lm_ln_g"], params["lm_ln_b"]], axis=0)     # (2, n_embd)

    return (params["enc_w1"].astype(bf16), w_lat.astype(bf16), w_ed.astype(bf16),
            w_rec.astype(bf16), head.astype(bf16), small, lmb, lnp)


def mol_decoder_forward(x, params, *, max_len, n_embd,
                        block_rows_ae=256, block_rows_lm=512):
    B = x.shape[0]
    feat = n_embd * max_len
    n_vocab = params["lm_head_w"].shape[1]
    set_cols = _round_up(n_embd, 128)
    n_vocab_pad = _round_up(n_vocab, 128)
    vmem_limit = 32 * 1024 * 1024

    enc_w1, w_lat, w_ed, w_rec, head, small, lmb, lnp = _fuse_params(
        params, max_len=max_len, n_embd=n_embd)

    # ---------------- kernel A: autoencoder ----------------
    tb, b_pad = _pick_rows_tile(B, block_rows_ae)
    if b_pad != B:
        x = jnp.pad(x, ((0, b_pad - B), (0, 0)))   # zero rows: LN var=0 -> rsqrt(1e-5), benign

    flops_a = 2 * b_pad * (feat * n_embd + n_embd * set_cols + n_embd * n_embd + n_embd * feat)
    bytes_a = (4 * b_pad * (2 * feat + set_cols)
               + 2 * (enc_w1.size + w_lat.size + w_ed.size + w_rec.size)
               + 4 * (small.size + lmb.size))
    cost_a = pl.CostEstimate(flops=int(flops_a),
                             transcendentals=int(b_pad * (2 * n_embd + feat)),
                             bytes_accessed=int(bytes_a))

    pred_set_pad, emb = pl.pallas_call(
        autoencoder_kernel,
        out_shape=(jax.ShapeDtypeStruct((b_pad, set_cols), jnp.float32),
                   jax.ShapeDtypeStruct((b_pad, feat), jnp.float32)),
        grid=(b_pad // tb,),
        in_specs=[
            pl.BlockSpec((tb, feat), lambda i: (i, 0)),         # x (row blocks)
            pl.BlockSpec(enc_w1.shape, lambda i: (0, 0)),       # weights: resident, constant idx
            pl.BlockSpec(w_lat.shape, lambda i: (0, 0)),
            pl.BlockSpec(w_ed.shape, lambda i: (0, 0)),
            pl.BlockSpec(w_rec.shape, lambda i: (0, 0)),
            pl.BlockSpec(small.shape, lambda i: (0, 0)),
            pl.BlockSpec(lmb.shape, lambda i: (0, 0)),
        ],
        out_specs=(pl.BlockSpec((tb, set_cols), lambda i: (i, 0)),
                   pl.BlockSpec((tb, feat), lambda i: (i, 0))),
        compiler_params=pltpu.CompilerParams(dimension_semantics=("parallel",),
                                             vmem_limit_bytes=vmem_limit),
        cost_estimate=cost_a,
    )(x, enc_w1, w_lat, w_ed, w_rec, small, lmb)

    # ---------------- kernel B: LangLayer tail over token rows ----------------
    rows = b_pad * max_len
    emb_tok = emb.reshape(rows, n_embd)          # free row-major view: (B_pad*max_len, n_embd)
    tb2, rows_pad = _pick_rows_tile(rows, block_rows_lm)
    if rows_pad != rows:
        emb_tok = jnp.pad(emb_tok, ((0, rows_pad - rows), (0, 0)))

    tn = 128
    for cand in (512, 256, 128):
        if n_vocab_pad % cand == 0:
            tn = cand
            break

    flops_b = 2 * rows_pad * n_embd * n_vocab_pad
    bytes_b = 4 * rows_pad * (n_embd + n_vocab_pad) + 2 * head.size + 4 * lnp.size
    cost_b = pl.CostEstimate(flops=int(flops_b), transcendentals=0, bytes_accessed=int(bytes_b))

    pred_ids_flat = pl.pallas_call(
        langlayer_kernel,
        out_shape=jax.ShapeDtypeStruct((rows_pad, n_vocab_pad), jnp.float32),
        grid=(rows_pad // tb2, n_vocab_pad // tn),
        in_specs=[
            pl.BlockSpec((tb2, n_embd), lambda i, j: (i, 0)),   # token rows
            pl.BlockSpec(lnp.shape, lambda i, j: (0, 0)),       # LN params (resident)
            pl.BlockSpec((n_embd, tn), lambda i, j: (0, j)),    # dense head, vocab column tiles
        ],
        out_specs=pl.BlockSpec((tb2, tn), lambda i, j: (i, j)),
        compiler_params=pltpu.CompilerParams(dimension_semantics=("parallel", "parallel"),
                                             vmem_limit_bytes=vmem_limit),
        cost_estimate=cost_b,
    )(emb_tok, lnp, head)

    pred_set = pred_set_pad[:B, :n_embd]
    pred_ids = pred_ids_flat[:B * max_len, :n_vocab].reshape(B, max_len, n_vocab)
    return pred_set, pred_ids


# ---------------------------------------------------------------------------
# deterministic parameter init (synthetic weights; shapes match the nn.Module)
# Linear weights are stored (in_features, out_features) so the kernel does x @ W.
# ---------------------------------------------------------------------------
def init_params(key, n_vocab, max_len, n_embd):
    feature_size = n_embd * max_len
    latent_size = n_embd
    keys = jax.random.split(key, 8)

    def w(k, fan_in, fan_out):
        return (jax.random.normal(k, (fan_in, fan_out), jnp.float32)
                / np.sqrt(fan_in)).astype(jnp.float32)

    return {
        # encoder: fc1(feature->latent), ln(latent), lat(latent->latent, no bias)
        "enc_w1": w(keys[0], feature_size, latent_size),
        "enc_b1": jnp.zeros((1, latent_size), jnp.float32) + 0.01,
        "enc_ln_g": jnp.ones((1, latent_size), jnp.float32),
        "enc_ln_b": jnp.zeros((1, latent_size), jnp.float32),
        "enc_lat": w(keys[1], latent_size, latent_size),
        # decoder: fc1(latent->latent), ln(latent), rec(latent->feature, no bias)
        "dec_w1": w(keys[2], latent_size, latent_size),
        "dec_b1": jnp.zeros((1, latent_size), jnp.float32) - 0.01,
        "dec_ln_g": jnp.ones((1, latent_size), jnp.float32),
        "dec_ln_b": jnp.zeros((1, latent_size), jnp.float32),
        "dec_rec": w(keys[3], latent_size, feature_size),
        # lm head: embed(n_embd->n_embd), ln(n_embd), head(n_embd->n_vocab, no bias)
        "lm_w": w(keys[4], n_embd, n_embd),
        "lm_b": jnp.zeros((1, n_embd), jnp.float32) + 0.02,
        "lm_ln_g": jnp.ones((1, n_embd), jnp.float32),
        "lm_ln_b": jnp.zeros((1, n_embd), jnp.float32),
        "lm_head_w": w(keys[5], n_embd, n_vocab),
    }


# ---------------------------------------------------------------------------
# pure-JAX f32 reference mirroring the original (unfused) module structure
# ---------------------------------------------------------------------------
def reference_forward(x, p, *, max_len, n_embd):
    def ln(v, g, b):
        mu = jnp.mean(v, axis=-1, keepdims=True)
        var = jnp.mean(jnp.square(v - mu), axis=-1, keepdims=True)
        return (v - mu) * lax.rsqrt(var + 1e-5) * g + b

    gelu = lambda v: 0.5 * v * (1.0 + lax.erf(v * _INV_SQRT2))
    dot = lambda a, b: jnp.dot(a, b, precision=_HP)

    h = ln(gelu(dot(x, p["enc_w1"]) + p["enc_b1"]), p["enc_ln_g"], p["enc_ln_b"])
    pred_set = dot(h, p["enc_lat"])
    d = ln(gelu(dot(pred_set, p["dec_w1"]) + p["dec_b1"]), p["dec_ln_g"], p["dec_ln_b"])
    pred_cte = dot(d, p["dec_rec"])
    t = pred_cte.reshape(-1, max_len, n_embd)
    t = gelu(jnp.einsum("bsk,km->bsm", t, p["lm_w"], precision=_HP) + p["lm_b"])
    t = ln(t, p["lm_ln_g"], p["lm_ln_b"])
    pred_ids = jnp.einsum("bsk,kv->bsv", t, p["lm_head_w"], precision=_HP)
    return pred_set, pred_ids


if __name__ == "__main__":
    # small shapes consistent with the module
    B, n_vocab, max_len, n_embd = 2, 64, 8, 32
    feature_size = n_embd * max_len  # 256

    key = jax.random.PRNGKey(0)
    pkey, xkey = jax.random.split(key)
    params = init_params(pkey, n_vocab, max_len, n_embd)
    token_embeddings = jax.random.normal(xkey, (B, feature_size), jnp.float32)

    pred_set, pred_ids = mol_decoder_forward(
        token_embeddings, params, max_len=max_len, n_embd=n_embd
    )
    jax.block_until_ready((pred_set, pred_ids))

    ref_set, ref_ids = reference_forward(token_embeddings, params, max_len=max_len, n_embd=n_embd)
    # Tolerances are relaxed vs bit-exact because the kernel (a) algebraically folds weights
    # (different f32 rounding order) and (b) feeds bf16 inputs to the MXU with f32 accumulation,
    # while the reference is pure f32.  pred_set passes through 2 matmuls + 1 LayerNorm;
    # pred_ids through 5 matmuls + 3 LayerNorms, hence the looser bound.
    np.testing.assert_allclose(np.asarray(pred_set), np.asarray(ref_set), rtol=5e-2, atol=5e-2)
    np.testing.assert_allclose(np.asarray(pred_ids), np.asarray(ref_ids), rtol=1e-1, atol=1e-1)

    assert pred_set.shape == (B, n_embd)
    assert pred_ids.shape == (B, max_len, n_vocab)
    print("KERNEL_OK")
</pallas_src>

<mosaic_0001>
module attributes {stable_mosaic.version = 11 : i64} {
  func.func @autoencoder_kernel(%arg0: i32, %arg1: memref<8x256xf32, #tpu.memory_space<vmem>>, %arg2: memref<256x32xbf16, #tpu.memory_space<vmem>>, %arg3: memref<32x128xbf16, #tpu.memory_space<vmem>>, %arg4: memref<32x32xbf16, #tpu.memory_space<vmem>>, %arg5: memref<32x256xbf16, #tpu.memory_space<vmem>>, %arg6: memref<6x32xf32, #tpu.memory_space<vmem>>, %arg7: memref<1x256xf32, #tpu.memory_space<vmem>>, %arg8: memref<8x128xf32, #tpu.memory_space<vmem>>, %arg9: memref<8x256xf32, #tpu.memory_space<vmem>>) attributes {dimension_semantics = [#tpu.dimension_semantics<parallel>], iteration_bounds = array<i64: 1>, scalar_prefetch = 0 : i64, scratch_operands = 0 : i64, tpu.core_type = #tpu.core_type<tc>, window_params = [{transform_indices = @transform_0, window_bounds = array<i64: 8, 256>}, {pipeline_mode = #tpu.pipeline_mode<synchronous>, transform_indices = @transform_1, window_bounds = array<i64: 256, 32>}, {pipeline_mode = #tpu.pipeline_mode<synchronous>, transform_indices = @transform_2, window_bounds = array<i64: 32, 128>}, {pipeline_mode = #tpu.pipeline_mode<synchronous>, transform_indices = @transform_3, window_bounds = array<i64: 32, 32>}, {pipeline_mode = #tpu.pipeline_mode<synchronous>, transform_indices = @transform_4, window_bounds = array<i64: 32, 256>}, {pipeline_mode = #tpu.pipeline_mode<synchronous>, transform_indices = @transform_5, window_bounds = array<i64: 6, 32>}, {pipeline_mode = #tpu.pipeline_mode<synchronous>, transform_indices = @transform_6, window_bounds = array<i64: 1, 256>}, {transform_indices = @transform_7, window_bounds = array<i64: 8, 128>}, {transform_indices = @transform_8, window_bounds = array<i64: 8, 256>}]} {
    %c0 = arith.constant 0 : index
    %c0_0 = arith.constant 0 : index
    %0 = vector.load %arg6[%c0, %c0_0] : memref<6x32xf32, #tpu.memory_space<vmem>>, vector<6x32xf32>
    %1 = vector.extract_strided_slice %0 {offsets = [0, 0], sizes = [1, 32], strides = [1, 1]} : vector<6x32xf32> to vector<1x32xf32>
    %2 = vector.extract_strided_slice %0 {offsets = [1, 0], sizes = [1, 32], strides = [1, 1]} : vector<6x32xf32> to vector<1x32xf32>
    %3 = vector.extract_strided_slice %0 {offsets = [2, 0], sizes = [1, 32], strides = [1, 1]} : vector<6x32xf32> to vector<1x32xf32>
    %4 = vector.extract_strided_slice %0 {offsets = [3, 0], sizes = [1, 32], strides = [1, 1]} : vector<6x32xf32> to vector<1x32xf32>
    %5 = vector.extract_strided_slice %0 {offsets = [4, 0], sizes = [1, 32], strides = [1, 1]} : vector<6x32xf32> to vector<1x32xf32>
    %6 = vector.extract_strided_slice %0 {offsets = [5, 0], sizes = [1, 32], strides = [1, 1]} : vector<6x32xf32> to vector<1x32xf32>
    %c0_1 = arith.constant 0 : index
    %c0_2 = arith.constant 0 : index
    %7 = vector.load %arg1[%c0_1, %c0_2] : memref<8x256xf32, #tpu.memory_space<vmem>>, vector<8x256xf32>
    %c0_3 = arith.constant 0 : index
    %c0_4 = arith.constant 0 : index
    %8 = vector.load %arg2[%c0_3, %c0_4] : memref<256x32xbf16, #tpu.memory_space<vmem>>, vector<256x32xbf16>
    %9 = arith.truncf %7 : vector<8x256xf32> to vector<8x256xbf16>
    %cst = arith.constant dense<0.000000e+00> : vector<8x32xf32>
    %10 = tpu.matmul %9, %8, %cst {dimension_numbers = #tpu.dot_dimension_numbers<[1], [0], [0], [1], [0, 0, 1, 1], [], []>} : vector<8x256xbf16>, vector<256x32xbf16>, vector<8x32xf32> -> vector<8x32xf32>
    %11 = vector.broadcast %1 : vector<1x32xf32> to vector<8x32xf32>
    %12 = arith.addf %10, %11 : vector<8x32xf32>
    %cst_5 = arith.constant 5.000000e-01 : f32
    %13 = vector.broadcast %cst_5 : f32 to vector<8x32xf32>
    %14 = arith.mulf %13, %12 : vector<8x32xf32>
    %cst_6 = arith.constant 0.707106769 : f32
    %15 = vector.broadcast %cst_6 : f32 to vector<8x32xf32>
    %16 = arith.mulf %12, %15 : vector<8x32xf32>
    %17 = math.erf %16 : vector<8x32xf32>
    %cst_7 = arith.constant 1.000000e+00 : f32
    %18 = vector.broadcast %cst_7 : f32 to vector<8x32xf32>
    %19 = arith.addf %18, %17 : vector<8x32xf32>
    %20 = arith.mulf %14, %19 : vector<8x32xf32>
    %cst_8 = arith.constant dense<0.000000e+00> : vector<8xf32>
    %21 = vector.multi_reduction <add>, %20, %cst_8 [1] : vector<8x32xf32> to vector<8xf32>
    %22 = vector.shape_cast %21 : vector<8xf32> to vector<8x1xf32>
    %cst_9 = arith.constant 3.200000e+01 : f32
    %23 = vector.broadcast %cst_9 : f32 to vector<8x1xf32>
    %24 = arith.divf %22, %23 : vector<8x1xf32>
    %25 = vector.broadcast %24 : vector<8x1xf32> to vector<8x32xf32>
    %26 = arith.subf %20, %25 : vector<8x32xf32>
    %27 = arith.mulf %26, %26 : vector<8x32xf32>
    %cst_10 = arith.constant dense<0.000000e+00> : vector<8xf32>
    %28 = vector.multi_reduction <add>, %27, %cst_10 [1] : vector<8x32xf32> to vector<8xf32>
    %29 = vector.shape_cast %28 : vector<8xf32> to vector<8x1xf32>
    %cst_11 = arith.constant 3.200000e+01 : f32
    %30 = vector.broadcast %cst_11 : f32 to vector<8x1xf32>
    %31 = arith.divf %29, %30 : vector<8x1xf32>
    %32 = vector.broadcast %24 : vector<8x1xf32> to vector<8x32xf32>
    %33 = arith.subf %20, %32 : vector<8x32xf32>
    %cst_12 = arith.constant 9.99999974E-6 : f32
    %34 = vector.broadcast %cst_12 : f32 to vector<8x1xf32>
    %35 = arith.addf %31, %34 : vector<8x1xf32>
    %36 = math.rsqrt %35 : vector<8x1xf32>
    %37 = vector.broadcast %36 : vector<8x1xf32> to vector<8x32xf32>
    %38 = arith.mulf %33, %37 : vector<8x32xf32>
    %39 = vector.broadcast %2 : vector<1x32xf32> to vector<8x32xf32>
    %40 = arith.mulf %38, %39 : vector<8x32xf32>
    %41 = vector.broadcast %3 : vector<1x32xf32> to vector<8x32xf32>
    %42 = arith.addf %40, %41 : vector<8x32xf32>
    %43 = arith.truncf %42 : vector<8x32xf32> to vector<8x32xbf16>
    %c0_13 = arith.constant 0 : index
    %c0_14 = arith.constant 0 : index
    %44 = vector.load %arg3[%c0_13, %c0_14] : memref<32x128xbf16, #tpu.memory_space<vmem>>, vector<32x128xbf16>
    %cst_15 = arith.constant dense<0.000000e+00> : vector<8x128xf32>
    %45 = tpu.matmul %43, %44, %cst_15 {dimension_numbers = #tpu.dot_dimension_numbers<[1], [0], [0], [1], [0, 0, 1, 1], [], []>} : vector<8x32xbf16>, vector<32x128xbf16>, vector<8x128xf32> -> vector<8x128xf32>
    %c0_16 = arith.constant 0 : index
    %c0_17 = arith.constant 0 : index
    %46 = vector.load %arg8[%c0_16, %c0_17] : memref<8x128xf32, #tpu.memory_space<vmem>>, vector<8x128xf32>
    tpu.vector_store %arg8[%c0_16, %c0_17], %45 {strides = array<i32>} : memref<8x128xf32, #tpu.memory_space<vmem>>, vector<8x128xf32>,
    %c0_18 = arith.constant 0 : index
    %c0_19 = arith.constant 0 : index
    %47 = vector.load %arg4[%c0_18, %c0_19] : memref<32x32xbf16, #tpu.memory_space<vmem>>, vector<32x32xbf16>
    %cst_20 = arith.constant dense<0.000000e+00> : vector<8x32xf32>
    %48 = tpu.matmul %43, %47, %cst_20 {dimension_numbers = #tpu.dot_dimension_numbers<[1], [0], [0], [1], [0, 0, 1, 1], [], []>} : vector<8x32xbf16>, vector<32x32xbf16>, vector<8x32xf32> -> vector<8x32xf32>
    %49 = vector.broadcast %4 : vector<1x32xf32> to vector<8x32xf32>
    %50 = arith.addf %48, %49 : vector<8x32xf32>
    %cst_21 = arith.constant 5.000000e-01 : f32
    %51 = vector.broadcast %cst_21 : f32 to vector<8x32xf32>
    %52 = arith.mulf %51, %50 : vector<8x32xf32>
    %cst_22 = arith.constant 0.707106769 : f32
    %53 = vector.broadcast %cst_22 : f32 to vector<8x32xf32>
    %54 = arith.mulf %50, %53 : vector<8x32xf32>
    %55 = math.erf %54 : vector<8x32xf32>
    %cst_23 = arith.constant 1.000000e+00 : f32
    %56 = vector.broadcast %cst_23 : f32 to vector<8x32xf32>
    %57 = arith.addf %56, %55 : vector<8x32xf32>
    %58 = arith.mulf %52, %57 : vector<8x32xf32>
    %cst_24 = arith.constant dense<0.000000e+00> : vector<8xf32>
    %59 = vector.multi_reduction <add>, %58, %cst_24 [1] : vector<8x32xf32> to vector<8xf32>
    %60 = vector.shape_cast %59 : vector<8xf32> to vector<8x1xf32>
    %cst_25 = arith.constant 3.200000e+01 : f32
    %61 = vector.broadcast %cst_25 : f32 to vector<8x1xf32>
    %62 = arith.divf %60, %61 : vector<8x1xf32>
    %63 = vector.broadcast %62 : vector<8x1xf32> to vector<8x32xf32>
    %64 = arith.subf %58, %63 : vector<8x32xf32>
    %65 = arith.mulf %64, %64 : vector<8x32xf32>
    %cst_26 = arith.constant dense<0.000000e+00> : vector<8xf32>
    %66 = vector.multi_reduction <add>, %65, %cst_26 [1] : vector<8x32xf32> to vector<8xf32>
    %67 = vector.shape_cast %66 : vector<8xf32> to vector<8x1xf32>
    %cst_27 = arith.constant 3.200000e+01 : f32
    %68 = vector.broadcast %cst_27 : f32 to vector<8x1xf32>
    %69 = arith.divf %67, %68 : vector<8x1xf32>
    %70 = vector.broadcast %62 : vector<8x1xf32> to vector<8x32xf32>
    %71 = arith.subf %58, %70 : vector<8x32xf32>
    %cst_28 = arith.constant 9.99999974E-6 : f32
    %72 = vector.broadcast %cst_28 : f32 to vector<8x1xf32>
    %73 = arith.addf %69, %72 : vector<8x1xf32>
    %74 = math.rsqrt %73 : vector<8x1xf32>
    %75 = vector.broadcast %74 : vector<8x1xf32> to vector<8x32xf32>
    %76 = arith.mulf %71, %75 : vector<8x32xf32>
    %77 = vector.broadcast %5 : vector<1x32xf32> to vector<8x32xf32>
    %78 = arith.mulf %76, %77 : vector<8x32xf32>
    %79 = vector.broadcast %6 : vector<1x32xf32> to vector<8x32xf32>
    %80 = arith.addf %78, %79 : vector<8x32xf32>
    %c0_29 = arith.constant 0 : index
    %c0_30 = arith.constant 0 : index
    %81 = vector.load %arg5[%c0_29, %c0_30] : memref<32x256xbf16, #tpu.memory_space<vmem>>, vector<32x256xbf16>
    %82 = arith.truncf %80 : vector<8x32xf32> to vector<8x32xbf16>
    %cst_31 = arith.constant dense<0.000000e+00> : vector<8x256xf32>
    %83 = tpu.matmul %82, %81, %cst_31 {dimension_numbers = #tpu.dot_dimension_numbers<[1], [0], [0], [1], [0, 0, 1, 1], [], []>} : vector<8x32xbf16>, vector<32x256xbf16>, vector<8x256xf32> -> vector<8x256xf32>
    %c0_32 = arith.constant 0 : index
    %c0_33 = arith.constant 0 : index
    %84 = vector.load %arg7[%c0_32, %c0_33] : memref<1x256xf32, #tpu.memory_space<vmem>>, vector<1x256xf32>
    %85 = vector.broadcast %84 : vector<1x256xf32> to vector<8x256xf32>
    %86 = arith.addf %83, %85 : vector<8x256xf32>
    %cst_34 = arith.constant 5.000000e-01 : f32
    %87 = vector.broadcast %cst_34 : f32 to vector<8x256xf32>
    %88 = arith.mulf %87, %86 : vector<8x256xf32>
    %cst_35 = arith.constant 0.707106769 : f32
    %89 = vector.broadcast %cst_35 : f32 to vector<8x256xf32>
    %90 = arith.mulf %86, %89 : vector<8x256xf32>
    %91 = math.erf %90 : vector<8x256xf32>
    %cst_36 = arith.constant 1.000000e+00 : f32
    %92 = vector.broadcast %cst_36 : f32 to vector<8x256xf32>
    %93 = arith.addf %92, %91 : vector<8x256xf32>
    %94 = arith.mulf %88, %93 : vector<8x256xf32>
    %c0_37 = arith.constant 0 : index
    %c0_38 = arith.constant 0 : index
    %95 = vector.load %arg9[%c0_37, %c0_38] : memref<8x256xf32, #tpu.memory_space<vmem>>, vector<8x256xf32>
    tpu.vector_store %arg9[%c0_37, %c0_38], %94 {strides = array<i32>} : memref<8x256xf32, #tpu.memory_space<vmem>>, vector<8x256xf32>,
    return
  }
  func.func @transform_0(%arg0: i32) -> (i32, i32) {
    %c0_i32 = arith.constant 0 : i32
    %c0_i32_0 = arith.constant 0 : i32
    return %arg0, %c0_i32 : i32, i32
  }
  func.func @transform_1(%arg0: i32) -> (i32, i32) {
    %c0_i32 = arith.constant 0 : i32
    %c0_i32_0 = arith.constant 0 : i32
    %c0_i32_1 = arith.constant 0 : i32
    return %c0_i32, %c0_i32_0 : i32, i32
  }
  func.func @transform_2(%arg0: i32) -> (i32, i32) {
    %c0_i32 = arith.constant 0 : i32
    %c0_i32_0 = arith.constant 0 : i32
    %c0_i32_1 = arith.constant 0 : i32
    return %c0_i32, %c0_i32_0 : i32, i32
  }
  func.func @transform_3(%arg0: i32) -> (i32, i32) {
    %c0_i32 = arith.constant 0 : i32
    %c0_i32_0 = arith.constant 0 : i32
    %c0_i32_1 = arith.constant 0 : i32
    return %c0_i32, %c0_i32_0 : i32, i32
  }
  func.func @transform_4(%arg0: i32) -> (i32, i32) {
    %c0_i32 = arith.constant 0 : i32
    %c0_i32_0 = arith.constant 0 : i32
    %c0_i32_1 = arith.constant 0 : i32
    return %c0_i32, %c0_i32_0 : i32, i32
  }
  func.func @transform_5(%arg0: i32) -> (i32, i32) {
    %c0_i32 = arith.constant 0 : i32
    %c0_i32_0 = arith.constant 0 : i32
    %c0_i32_1 = arith.constant 0 : i32
    return %c0_i32, %c0_i32_0 : i32, i32
  }
  func.func @transform_6(%arg0: i32) -> (i32, i32) {
    %c0_i32 = arith.constant 0 : i32
    %c0_i32_0 = arith.constant 0 : i32
    %c0_i32_1 = arith.constant 0 : i32
    return %c0_i32, %c0_i32_0 : i32, i32
  }
  func.func @transform_7(%arg0: i32) -> (i32, i32) {
    %c0_i32 = arith.constant 0 : i32
    %c0_i32_0 = arith.constant 0 : i32
    return %arg0, %c0_i32 : i32, i32
  }
  func.func @transform_8(%arg0: i32) -> (i32, i32) {
    %c0_i32 = arith.constant 0 : i32
    %c0_i32_0 = arith.constant 0 : i32
    return %arg0, %c0_i32 : i32, i32
  }
}

</mosaic_0001>

<bundles_post_ra>
// kernel: tpu_custom_call.1
= control target key start
LH: loop header
LB: loop body
LE: loop exit
PB: predicated region body
PF: predicated region fallthrough
CT: control target
= control target key end

     0   :  { %14 = vsyncpa [#allocation3], 0  ;;  %s839_s0 = inlined_call_operand.vmem [shape: f32[8,256], index: 0, kind: input, shape index: {}]   ;;  %s840_s1 = inlined_call_operand.vmem [shape: bf16[256,32], index: 1, kind: input, shape index: {}]   ;;  %s841_s2 = inlined_call_operand.vmem [shape: bf16[32,128], index: 2, kind: input, shape index: {}]   ;;  %s842_s3 = inlined_call_operand.vmem [shape: bf16[32,32], index: 3, kind: input, shape index: {}]   ;;  %s843_s4 = inlined_call_operand.vmem [shape: bf16[32,256], index: 4, kind: input, shape index: {}]   ;;  %s844_s5 = inlined_call_operand.vmem [shape: f32[6,32], index: 5, kind: input, shape index: {}]   ;;  %s845_s6 = inlined_call_operand.vmem [shape: f32[1,256], index: 6, kind: input, shape index: {}]   ;;  %s846_s7 = inlined_call_operand.hbm [shape: f32[8,128], index: 7, kind: output, shape index: {0}]   ;;  %s847_s8 = inlined_call_operand.hbm [shape: f32[8,256], index: 8, kind: output, shape index: {1}]  }
   0x1   :  { %v584_v0 = vld [vmem:[%s840_s1 + $0x78] sm:$0xff]   ;;  %v586_v2 = vld [vmem:[%s840_s1 + $0x70] sm:$0xff]   ;;  %v588_v4 = vld [vmem:[%s840_s1 + $0x68] sm:$0xff]  }
   0x2   :  { %v585_v1 = vld [vmem:[%s840_s1 + $0x38] sm:$0xff]   ;;  %535 = vmatprep.subr.bf16.mxu0 %v584_v0  ;;  %v587_v3 = vld [vmem:[%s840_s1 + $0x30] sm:$0xff]   ;;  %v589_v5 = vld [vmem:[%s840_s1 + $0x28] sm:$0xff]  }
   0x3   :  { %536 = vmatpush3.bf16.msra.mxu0 %v585_v1  ;;  %v590_v6 = vld [vmem:[%s840_s1 + $0x60] sm:$0xff]   ;;  %v592_v8 = vld [vmem:[%s840_s1 + $0x58] sm:$0xff]   ;;  %v594_v10 = vld [vmem:[%s840_s1 + $0x50] sm:$0xff]  }
   0x4   :  { %537 = vmatprep.subr.bf16.mxu0 %v586_v2  ;;  %v591_v7 = vld [vmem:[%s840_s1 + $0x20] sm:$0xff]   ;;  %v593_v9 = vld [vmem:[%s840_s1 + $0x18] sm:$0xff]   ;;  %v33_v11 = vld [vmem:[%s839_s0 + $0x8] sm:$0xff] }
   0x5   :  { %v595_v12 = vld [vmem:[%s840_s1 + $0x10] sm:$0xff]   ;;  %v67_v13 = vpack.c.bf16 %v33_v11, %v33_v11  ;;  %v596_v14 = vld [vmem:[%s840_s1 + $0x48] sm:$0xff]  }
   0x7   :  { %538 = vmatpush3.bf16.msra.mxu0 %v587_v3  ;;  %200 = vmatprep.mubr.bf16.mxu0 %v67_v13 }
   0x8   :  { %539 = vmatprep.subr.bf16.mxu0 %v588_v4 }
   0xb   :  { %540 = vmatpush3.bf16.msra.mxu0 %v589_v5 }
   0xc   :  { %541 = vmatprep.subr.bf16.mxu0 %v590_v6 }
   0xf   :  { %542 = vmatpush3.bf16.msra.mxu0 %v591_v7 }
  0x10   :  { %543 = vmatprep.subr.bf16.mxu0 %v592_v8 }
  0x13   :  { %544 = vmatpush3.bf16.msra.mxu0 %v593_v9 }
  0x14   :  { %545 = vmatprep.subr.bf16.mxu0 %v594_v10 }
  0x15   :  { %15 = vsyncpa [#allocation5], 0  ;;  %v597_v15 = vld [vmem:[%s840_s1 + $0x8] sm:$0xff]   ;;  %v598_v16 = vld [vmem:[%s840_s1 + $0x40] sm:$0xff]   ;;  %v68_v20 = vlaneseq  ;;  %vm213_vm0 = vcmask 261120   ;;  %v666_v43 = vmov 0.0  }
  0x16   :  { %v599_v17 = vld [vmem:[%s840_s1] sm:$0xff]   ;;  %v600_v42 = vld [vmem:[%s841_s2 + $0x8] sm:$0xff]   ;;  %563 = vmatprep.subr.bf16.mxu1 %v666_v43  ;;  %vm667_vm1 = vmmov 0  }
  0x17   :  { %546 = vmatpush3.bf16.msra.mxu0 %v595_v12  ;;  %v32_v18 = vld [vmem:[%s839_s0] sm:$0xff]  ;;  %v770_v21 = vshrl.u32 %v68_v20, 7  ;;  %567 = vmatprep.mubr.msk.bf16.mxu1 %vm667_vm1, %v666_v43  ;;  %v602_v56 = vld [vmem:[%s842_s3 + $0x8] sm:$0xff]  }
  0x18   :  { %547 = vmatprep.subr.bf16.mxu0 %v596_v14  ;;  %v66_v19 = vpack.c.bf16 %v32_v18, %v32_v18  ;;  %v776_v23 = vld [vmem:[%s844_s5] sm:$0x3f]  ;;  %564 = vmatpush3.bf16.msra.mxu1 %v600_v42  ;;  %v604_v18 = vld [vmem:[%s843_s4 + $0x10] ss:$8 sps:$4 sm:$0xff]  }
  0x19   :  { %v70_v22 = vsub.s32 0, %v770_v21  ;;  %v601_v44 = vld [vmem:[%s841_s2] sm:$0xff]   ;;  %565 = vmatprep.subr.bf16.mxu1 %v666_v43  ;;  %v230_v48 = vsub.s32 1, %v770_v21  ;;  %v235_v49 = vsub.s32 2, %v770_v21  ;;  %v305_v60 = vsub.s32 3, %v770_v21 }
  0x1a   :  { %v603_v58 = vld [vmem:[%s842_s3] sm:$0xff]  }
  0x1b   :  { %548 = vmatpush3.bf16.msra.mxu0 %v597_v15  ;;  %v71_v25 = vrot.slane %v776_v23, %v70_v22  ;;  %v231_v50 = vrot.slane %v776_v23, %v230_v48  ;;  %v236_v53 = vrot.slane %v776_v23, %v235_v49  ;;  %v306_v63 = vrot.slane %v776_v23, %v305_v60  ;;  %v607_v20 = vld [vmem:[%s843_s4] ss:$8 sps:$4 sm:$0xff]  }
  0x1c   :  { %549 = vmatprep.subr.bf16.mxu0 %v598_v16  ;;  %566 = vmatpush3.bf16.msra.mxu1 %v601_v44 }
  0x1d   :  { %571 = vmatprep.subr.bf16.mxu1 %v666_v43 }
  0x1f   :  { %550 = vmatpush3.bf16.msra.mxu0 %v599_v17  ;;  %v606_v17 = vld [vmem:[%s843_s4 + $0x14] ss:$8 sps:$4 sm:$0xff]  }
  0x22   :  { %201 = vmatmul.mubr.bf16.vlgmr.msra.gmra.mxu0 %v66_v19  ;;  %v609_v19 = vld [vmem:[%s843_s4 + $0x4] ss:$8 sps:$4 sm:$0xff]   ;;  %s669_s4 = smov [#allocation2]  }
  0x23   :  { %s486_s10 = sshll.u32 %s669_s4, 4  ;;  %s487_s10 = int_to_ptr.vmem [resolvable:$true] %s486_s10 }
  0x24   :  { %s622_s11 = scalar_lea.vmem %s487_s10, 128  ;;  %p627_p1 = scmp.lt.s32.totalorder %s487_s10, %s487_s10 }
  0x25   :  { %p623_p0 = scmp.ne.s32.totalorder %s487_s10, %s622_s11  ;;  %p628_p2 = scmp.lt.s32.totalorder %s622_s11, %s622_s11 }
  0x27   :  { %p629_p3 = por %p628_p2, %p627_p1 }
  0x29   :  { %p630_p4 = pnand %p629_p3, %p623_p0 }
  0xe2   :  { %v551_v24 = vpop.f32.mrf.mxu0 }
  0xe4   :  { %v552_v26 = vpop.f32.mrf.mxu0 }
  0xe5   :  { %v553_v27 = vadd.f32 %v552_v26, %v551_v24  ;;  %v668_v24 = vmov 0  }
  0xe6   :  { %v554_v28 = vpop.f32.mrf.mxu0 }
  0xe7   :  { %v203_v29 = vadd.f32 %v553_v27, %v71_v25  ;;  %v379_v28 = vsub.s32 4, %v770_v21 }
  0xe8   :  { %v555_v30 = vpop.f32.mrf.mxu0 }
  0xe9   :  { %v209_v31 = vmul.f32 0.70710677, %v203_v29  ;;  %v208_v33 = vmul.f32 0.5, %v203_v29  ;;  %v384_v29 = vsub.s32 5, %v770_v21  ;;  %v380_v30 = vrot.slane %v776_v23, %v379_v28 }
  0xeb   :  { %610 = verf.f32 %v209_v31 }
  0xf8   :  { %v611_v32 = vpop.eup %610 }
  0xf9   :  { %v211_v34 = vadd.f32 1.0, %v611_v32 }
  0xfb   :  { %v212_v35 = vmul.f32 %v211_v34, %v208_v33  ;;  %v385_v33 = vrot.slane %v776_v23, %v384_v29 }
  0xfd   :  { %v214_v36 = vsel %vm213_vm0, %v212_v35, 0.0 }
  0xfe   :  { %215 = vadd.xlane.f32.xlu0 %v214_v36 }
 0x187   :  { %v216_v37 = vpop.xlane.xlu0 %215 }
 0x188   :  { %v218_v38 = vmul.f32 0.03125, %v216_v37 }
 0x18a   :  { %v219_v39 = vsub.f32 %v212_v35, %v218_v38 }
 0x18c   :  { %v220_v40 = vmul.f32 %v219_v39, %v219_v39 }
 0x18e   :  { %v221_v41 = vsel %vm213_vm0, %v220_v40, 0.0 }
 0x18f   :  { %222 = vadd.xlane.f32.xlu0 %v221_v41 }
 0x218   :  { %v223_v45 = vpop.xlane.xlu0 %222 }
 0x219   :  { %v224_v46 = vmul.f32 0.03125, %v223_v45 }
 0x21b   :  { %v225_v47 = vadd.f32 1e-05, %v224_v46 }
 0x21d   :  { %612 = vrsqrt.f32 %v225_v47 }
 0x22a   :  { %v613_v51 = vpop.eup %612 }
 0x22b   :  { %v227_v52 = vmul.f32 %v613_v51, %v219_v39 }
 0x22d   :  { %v232_v54 = vmul.f32 %v231_v50, %v227_v52 }
 0x22f   :  { %v237_v55 = vadd.f32 %v236_v53, %v232_v54 }
 0x231   :  { %v238_v57 = vpack.c.bf16 %v237_v55, %v237_v55 }
 0x233   :  { %568 = vmatmul.mubr.msk.bf16.vlgmr.msra.gmra.mxu1 %vm213_vm0, %v238_v57 }
 0x234   :  { %572 = vmatpush3.bf16.msra.mxu1 %v602_v56  ;;  %575 = vmatprep.mubr.msk.bf16.mxu1 %vm667_vm1, %v666_v43 }
 0x235   :  { %573 = vmatprep.subr.bf16.mxu1 %v666_v43 }
 0x238   :  { %574 = vmatpush3.bf16.msra.mxu1 %v603_v58 }
 0x239   :  { %439 = vmatprep.subr.bf16.mxu1 %v606_v17 }
 0x23b   :  { %576 = vmatmul.mubr.msk.bf16.vlgmr.msra.gmra.mxu1 %vm213_vm0, %v238_v57 }
 0x23c   :  { %440 = vmatpush1.bf16.msra.mxu1 %v604_v18  ;;  %459 = vmatprep.mubr.bf16.mxu1 %v668_v24 }
 0x23d   :  { %441 = vmatprep.subr.bf16.mxu1 %v609_v19 }
 0x240   :  { %442 = vmatpush1.bf16.msra.mxu1 %v607_v20 }
 0x2f3   :  { %v292_v59 = vpop.f32.mrf.mxu1 }
 0x2f4   :  { %298 = vst [vmem:[#allocation2] sm:$0xff] %v292_v59 }
 0x2f5   :  { %v569_v61 = vpop.f32.mrf.mxu1 }
 0x2f7   :  { %v295_v62 = vpop.f32.mrf.mxu1 }
 0x2f9   :  { %v570_v0 = vpop.f32.mrf.mxu1 }
 0x2fb   :  { %v353_v1 = vpop.f32.mrf.mxu1 }
 0x2fc   :  { %v354_v2 = vadd.f32 %v353_v1, %v306_v63 }
 0x2fd   :  { %v577_v3 = vpop.f32.mrf.mxu1 }
 0x2fe   :  { %v360_v4 = vmul.f32 0.70710677, %v354_v2  ;;  %v359_v8 = vmul.f32 0.5, %v354_v2 }
 0x2ff   :  { %v356_v5 = vpop.f32.mrf.mxu1 }
 0x300   :  { %614 = verf.f32 %v360_v4 }
 0x301   :  { %v578_v6 = vpop.f32.mrf.mxu1 }
 0x30d   :  { %v615_v7 = vpop.eup %614 }
 0x30e   :  { %v362_v9 = vadd.f32 1.0, %v615_v7 }
 0x310   :  { %v363_v10 = vmul.f32 %v362_v9, %v359_v8 }
 0x312   :  { %v364_v11 = vsel %vm213_vm0, %v363_v10, 0.0 }
 0x313   :  { %365 = vadd.xlane.f32.xlu1 %v364_v11 }
 0x39c   :  { %v366_v12 = vpop.xlane.xlu1 %365 }
 0x39d   :  { %v367_v13 = vmul.f32 0.03125, %v366_v12 }
 0x39f   :  { %v368_v14 = vsub.f32 %v363_v10, %v367_v13 }
 0x3a1   :  { %v369_v15 = vmul.f32 %v368_v14, %v368_v14 }
 0x3a3   :  { %v370_v16 = vsel %vm213_vm0, %v369_v15, 0.0 }
 0x3a4   :  { %371 = vadd.xlane.f32.xlu1 %v370_v16 }
 0x42d   :  { %v372_v25 = vpop.xlane.xlu1 %371 }
 0x42e   :  { %v373_v26 = vmul.f32 0.03125, %v372_v25 }
 0x430   :  { %v374_v27 = vadd.f32 1e-05, %v373_v26 }
 0x432   :  { %616 = vrsqrt.f32 %v374_v27 }
 0x43f   :  { %v617_v31 = vpop.eup %616 }
 0x440   :  { %v376_v32 = vmul.f32 %v617_v31, %v368_v14 }
 0x442   :  { %v381_v34 = vmul.f32 %v380_v30, %v376_v32 }
 0x444   :  { %v386_v35 = vadd.f32 %v385_v33, %v381_v34 }
 0x446   :  { %v391_v36 = vpack.c.bf16 %v386_v35, %v386_v35 }
 0x448   :  { %534 = vmatmul.mubr.msk.bf16.vlgmr.msra.gmra.mxu1 %vm213_vm0, %v391_v36 }
 0x449   :  { %633 = shalt.err (!%p630_p4)
}
 0x44a   :  { %489 = dma.vmem_to_hbm [thread:$0]  %s487_s10, 128, %s846_s7, [#allocation3]   ;;  %v392_v23 = vld [vmem:[%s845_s6] sm:$0x3] }
 0x44b   :  { %v397_v37 = vrot.slane %v392_v23, %v70_v22  ;;  %v401_v38 = vrot.slane %v392_v23, %v230_v48  ;;  %s670_s6 = smov [#allocation4]  }
 0x44c   :  { %s496_s7 = sshll.u32 %s670_s6, 4  ;;  %s497_s7 = int_to_ptr.vmem [resolvable:$true] %s496_s7 }
 0x44d   :  { %s642_s16 = scalar_lea.vmem %s497_s7, 256  ;;  %p647_p6 = scmp.lt.s32.totalorder %s497_s7, %s497_s7 }
 0x44e   :  { %p643_p5 = scmp.ne.s32.totalorder %s497_s7, %s642_s16  ;;  %p648_p7 = scmp.lt.s32.totalorder %s642_s16, %s642_s16 }
 0x450   :  { %p649_p8 = por %p648_p7, %p647_p6 }
 0x452   :  { %p650_p9 = pnand %p649_p8, %p643_p5 }
 0x508   :  { %v461_v39 = vpop.f32.mrf.mxu1 }
 0x509   :  { %v462_v40 = vadd.f32 %v461_v39, %v397_v37 }
 0x50a   :  { %v463_v41 = vpop.f32.mrf.mxu1 }
 0x50b   :  { %v470_v42 = vmul.f32 0.70710677, %v462_v40  ;;  %v464_v43 = vadd.f32 %v463_v41, %v401_v38  ;;  %v468_v49 = vmul.f32 0.5, %v462_v40 }
 0x50c   :  { %v465_v44 = vpop.f32.mrf.mxu1 }
 0x50d   :  { %618 = verf.f32 %v470_v42  ;;  %v471_v45 = vmul.f32 0.70710677, %v464_v43  ;;  %v469_v22 = vmul.f32 0.5, %v464_v43 }
 0x50e   :  { %v466_v46 = vpop.f32.mrf.mxu1 }
 0x50f   :  { %620 = verf.f32 %v471_v45 }
 0x51a   :  { %v619_v47 = vpop.eup %618 }
 0x51b   :  { %v474_v50 = vadd.f32 1.0, %v619_v47 }
 0x51c   :  { %v621_v51 = vpop.eup %620 }
 0x51d   :  { %v475_v52 = vadd.f32 1.0, %v621_v51  ;;  %v476_v21 = vmul.f32 %v474_v50, %v468_v49 }
 0x51f   :  { %v477_v48 = vmul.f32 %v475_v52, %v469_v22  ;;  %478 = vst [vmem:[#allocation4] sm:$0xff] %v476_v21 }
 0x521   :  { %479 = vst [vmem:[#allocation4 + $0x8] sm:$0xff] %v477_v48 }
 0x522   :  { %653 = shalt.err (!%p650_p9)
}
 0x523   :  { %499 = dma.vmem_to_hbm [thread:$0]  %s497_s7, 256, %s847_s8, [#allocation5]  }
 0x524   :  { %662 = dma.done.wait [#allocation3], 128  }
 0x525   :  { %663 = vsyncadd [#allocation3], 4294967168 }
 0x526   :  { %664 = dma.done.wait [#allocation5], 256  }
 0x527   :  { %665 = vsyncadd [#allocation5], 4294967040 }
 0x528   :  { %506 = vsyncpa [#allocation3], 1 }
 0x529   :  { %507 = vsyncpa [#allocation5], 1 }

</bundles_post_ra>
